<compile_context>
chip_gen: v5e
topology: v5e:2x2
jax: 0.10.0
libtpu: 0.0.40
codegen_flags: <defaults>
</compile_context>

<pallas_src>
import jax
import jax.numpy as jnp
from jax.experimental import pallas as pl
from jax.experimental.pallas import tpu as pltpu


def policy_kernel(x_ref, w_ref, b_ref, u_ref, out_ref):
    num_actions = w_ref.shape[1]

    # logits = x @ W + b   (block_b, A), f32 accumulation on the MXU.
    logits = jnp.dot(x_ref[...], w_ref[...],
                     preferred_element_type=jnp.float32)
    logits = logits + b_ref[...]

    # Numerically-stable *unnormalized* softmax (normalization is fused into
    # the comparison below, so no per-element divide is needed).
    m = jnp.max(logits, axis=-1, keepdims=True)
    e = jnp.exp(logits - m)                              # (block_b, A)
    denom = jnp.sum(e, axis=-1, keepdims=True)           # (block_b, 1)

    # In-kernel upper-triangular ones matrix: tri[k, j] = 1.0 iff k <= j, so
    # (e @ tri)[b, j] = sum_{k <= j} e[b, k]  (cumulative sum on the MXU).
    row = jax.lax.broadcasted_iota(jnp.int32, (num_actions, num_actions), 0)
    col = jax.lax.broadcasted_iota(jnp.int32, (num_actions, num_actions), 1)
    tri = (row <= col).astype(jnp.float32)

    cdf = jnp.dot(e, tri, preferred_element_type=jnp.float32)  # (block_b, A)

    # Inverse-CDF sampling with fused normalization:
    #   cdf/denom < u   <=>   cdf < u * denom     (denom > 0)
    thresh = u_ref[...] * denom                                # (block_b, 1)
    below = (cdf < thresh).astype(jnp.float32)                 # (block_b, A)

    # Sampled index = number of CDF entries strictly below the draw.  Count
    # with a transposed-RHS matmul so the result comes out lane-dense as
    # (1, block_b):  idx[0, b] = sum_j below[b, j].
    ones_row = jnp.ones((1, num_actions), dtype=jnp.float32)
    idx_lane = jax.lax.dot_general(
        ones_row, below,
        dimension_numbers=(((1,), (1,)), ((), ())),
        preferred_element_type=jnp.float32)                    # (1, block_b)

    # Clamp handles the float edge case where cdf[A-1] < 1.0 and u lands above.
    out_ref[...] = jnp.minimum(idx_lane.astype(jnp.int32), num_actions - 1)


def policy_forward(x, w, b, u, *, block_b=None):
    """x: (B, I) f32, w: (I, A) f32, b: (1, A) f32, u: (B, 1) f32 in [0, 1)."""
    B, I = x.shape
    A = w.shape[1]

    if block_b is None:
        block_b = B if B <= 128 else 128

    # Pad the batch so it divides evenly into blocks (padding rows are sliced
    # off the result; their sampled actions are ignored).
    pad = (-B) % block_b
    if pad:
        x = jnp.pad(x, ((0, pad), (0, 0)))
        u = jnp.pad(u, ((0, pad), (0, 0)), constant_values=0.5)
    Bp = B + pad
    grid_b = Bp // block_b

    out = pl.pallas_call(
        policy_kernel,
        out_shape=jax.ShapeDtypeStruct((1, Bp), jnp.int32),
        grid=(grid_b,),
        in_specs=[
            pl.BlockSpec((block_b, I), lambda i: (i, 0)),  # x   (pipelined)
            pl.BlockSpec((I, A), lambda i: (0, 0)),        # W   (resident)
            pl.BlockSpec((1, A), lambda i: (0, 0)),        # b   (resident)
            pl.BlockSpec((block_b, 1), lambda i: (i, 0)),  # u   (pipelined)
        ],
        out_specs=pl.BlockSpec((1, block_b), lambda i: (0, i)),  # lane-dense
        compiler_params=pltpu.CompilerParams(
            dimension_semantics=("parallel",)),
    )(x, w, b, u)

    # (1, Bp) lane-dense -> (B, 1) to match torch.multinomial's shape.
    return out.reshape(Bp, 1)[:B]


if __name__ == "__main__":
    # Small shapes consistent with the module: Linear(num_inputs, num_actions)
    batch = 8
    num_inputs = 32
    num_actions = 16

    key = jax.random.PRNGKey(0)
    kx, kw, kb, ku = jax.random.split(key, 4)

    # Deterministic parameter init (PyTorch Linear default: U(-1/sqrt(fan_in), +))
    bound = 1.0 / jnp.sqrt(jnp.float32(num_inputs))
    w = jax.random.uniform(kw, (num_inputs, num_actions),
                           minval=-bound, maxval=bound, dtype=jnp.float32)
    b = jax.random.uniform(kb, (1, num_actions),
                           minval=-bound, maxval=bound, dtype=jnp.float32)

    x = jax.random.normal(kx, (batch, num_inputs), dtype=jnp.float32)
    # Uniform draws for the multinomial sample (one per batch row).
    # TODO(synk): torch.multinomial's internal RNG stream is not replicated;
    # the draw is supplied by the caller (could also use pltpu.prng_* in-kernel).
    u = jax.random.uniform(ku, (batch, 1), dtype=jnp.float32)

    actions = policy_forward(x, w, b, u)
    jax.block_until_ready(actions)

    assert actions.shape == (batch, 1)
    assert actions.dtype == jnp.int32
    assert bool(jnp.all(actions >= 0)) and bool(jnp.all(actions < num_actions))

    # Cross-check against a pure-JAX reference of the same sampling rule.
    logits = x @ w + b
    probs = jax.nn.softmax(logits, axis=-1)
    cdf = jnp.cumsum(probs, axis=-1)
    ref = jnp.minimum(jnp.sum((cdf < u).astype(jnp.int32), axis=-1, keepdims=True),
                      num_actions - 1)
    assert bool(jnp.all(actions == ref))

    print("KERNEL_OK")
</pallas_src>

<mosaic_0001>
module attributes {stable_mosaic.version = 11 : i64} {
  func.func @policy_kernel(%arg0: i32, %arg1: memref<8x32xf32, #tpu.memory_space<vmem>>, %arg2: memref<32x16xf32, #tpu.memory_space<vmem>>, %arg3: memref<1x16xf32, #tpu.memory_space<vmem>>, %arg4: memref<8x1xf32, #tpu.memory_space<vmem>>, %arg5: memref<1x8xi32, #tpu.memory_space<vmem>>) attributes {dimension_semantics = [#tpu.dimension_semantics<parallel>], iteration_bounds = array<i64: 1>, scalar_prefetch = 0 : i64, scratch_operands = 0 : i64, tpu.core_type = #tpu.core_type<tc>, window_params = [{transform_indices = @transform_0, window_bounds = array<i64: 8, 32>}, {pipeline_mode = #tpu.pipeline_mode<synchronous>, transform_indices = @transform_1, window_bounds = array<i64: 32, 16>}, {pipeline_mode = #tpu.pipeline_mode<synchronous>, transform_indices = @transform_2, window_bounds = array<i64: 1, 16>}, {transform_indices = @transform_3, window_bounds = array<i64: 8, 1>}, {transform_indices = @transform_4, window_bounds = array<i64: 1, 8>}]} {
    %c0 = arith.constant 0 : index
    %c0_0 = arith.constant 0 : index
    %0 = vector.load %arg1[%c0, %c0_0] : memref<8x32xf32, #tpu.memory_space<vmem>>, vector<8x32xf32>
    %c0_1 = arith.constant 0 : index
    %c0_2 = arith.constant 0 : index
    %1 = vector.load %arg2[%c0_1, %c0_2] : memref<32x16xf32, #tpu.memory_space<vmem>>, vector<32x16xf32>
    %cst = arith.constant dense<0.000000e+00> : vector<8x16xf32>
    %2 = tpu.matmul %0, %1, %cst {dimension_numbers = #tpu.dot_dimension_numbers<[1], [0], [0], [1], [0, 0, 1, 1], [], []>} : vector<8x32xf32>, vector<32x16xf32>, vector<8x16xf32> -> vector<8x16xf32>
    %c0_3 = arith.constant 0 : index
    %c0_4 = arith.constant 0 : index
    %3 = vector.load %arg3[%c0_3, %c0_4] : memref<1x16xf32, #tpu.memory_space<vmem>>, vector<1x16xf32>
    %4 = vector.broadcast %3 : vector<1x16xf32> to vector<8x16xf32>
    %5 = arith.addf %2, %4 : vector<8x16xf32>
    %cst_5 = arith.constant dense<0xFF800000> : vector<8xf32>
    %6 = vector.multi_reduction <maximumf>, %5, %cst_5 [1] : vector<8x16xf32> to vector<8xf32>
    %7 = vector.shape_cast %6 : vector<8xf32> to vector<8x1xf32>
    %8 = vector.broadcast %7 : vector<8x1xf32> to vector<8x16xf32>
    %9 = arith.subf %5, %8 : vector<8x16xf32>
    %10 = math.exp %9 : vector<8x16xf32>
    %cst_6 = arith.constant dense<0.000000e+00> : vector<8xf32>
    %11 = vector.multi_reduction <add>, %10, %cst_6 [1] : vector<8x16xf32> to vector<8xf32>
    %12 = vector.shape_cast %11 : vector<8xf32> to vector<8x1xf32>
    %13 = tpu.iota {dimensions = array<i32: 0>} : vector<16x16xi32>
    %14 = tpu.iota {dimensions = array<i32: 1>} : vector<16x16xi32>
    %15 = arith.cmpi sle, %13, %14 : vector<16x16xi32>
    %16 = arith.extui %15 : vector<16x16xi1> to vector<16x16xi32>
    %17 = arith.sitofp %16 : vector<16x16xi32> to vector<16x16xf32>
    %cst_7 = arith.constant dense<0.000000e+00> : vector<8x16xf32>
    %18 = tpu.matmul %10, %17, %cst_7 {dimension_numbers = #tpu.dot_dimension_numbers<[1], [0], [0], [1], [0, 0, 1, 1], [], []>} : vector<8x16xf32>, vector<16x16xf32>, vector<8x16xf32> -> vector<8x16xf32>
    %c0_8 = arith.constant 0 : index
    %c0_9 = arith.constant 0 : index
    %19 = vector.load %arg4[%c0_8, %c0_9] : memref<8x1xf32, #tpu.memory_space<vmem>>, vector<8x1xf32>
    %20 = arith.mulf %19, %12 : vector<8x1xf32>
    %21 = vector.broadcast %20 : vector<8x1xf32> to vector<8x16xf32>
    %22 = arith.cmpf olt, %18, %21 : vector<8x16xf32>
    %23 = arith.extui %22 : vector<8x16xi1> to vector<8x16xi32>
    %24 = arith.sitofp %23 : vector<8x16xi32> to vector<8x16xf32>
    %cst_10 = arith.constant 1.000000e+00 : f32
    %25 = vector.broadcast %cst_10 : f32 to vector<1x16xf32>
    %cst_11 = arith.constant dense<0.000000e+00> : vector<1x8xf32>
    %26 = tpu.matmul %25, %24, %cst_11 {dimension_numbers = #tpu.dot_dimension_numbers<[1], [1], [0], [0], [0, 0, 1, 0], [], []>} : vector<1x16xf32>, vector<8x16xf32>, vector<1x8xf32> -> vector<1x8xf32>
    %27 = arith.fptosi %26 : vector<1x8xf32> to vector<1x8xi32>
    %c15_i32 = arith.constant 15 : i32
    %28 = vector.broadcast %c15_i32 : i32 to vector<1x8xi32>
    %29 = arith.minsi %27, %28 : vector<1x8xi32>
    %c0_12 = arith.constant 0 : index
    %c0_13 = arith.constant 0 : index
    %30 = vector.load %arg5[%c0_12, %c0_13] : memref<1x8xi32, #tpu.memory_space<vmem>>, vector<1x8xi32>
    tpu.vector_store %arg5[%c0_12, %c0_13], %29 {strides = array<i32>} : memref<1x8xi32, #tpu.memory_space<vmem>>, vector<1x8xi32>,
    return
  }
  func.func @transform_0(%arg0: i32) -> (i32, i32) {
    %c0_i32 = arith.constant 0 : i32
    %c0_i32_0 = arith.constant 0 : i32
    return %arg0, %c0_i32 : i32, i32
  }
  func.func @transform_1(%arg0: i32) -> (i32, i32) {
    %c0_i32 = arith.constant 0 : i32
    %c0_i32_0 = arith.constant 0 : i32
    %c0_i32_1 = arith.constant 0 : i32
    return %c0_i32, %c0_i32_0 : i32, i32
  }
  func.func @transform_2(%arg0: i32) -> (i32, i32) {
    %c0_i32 = arith.constant 0 : i32
    %c0_i32_0 = arith.constant 0 : i32
    %c0_i32_1 = arith.constant 0 : i32
    return %c0_i32, %c0_i32_0 : i32, i32
  }
  func.func @transform_3(%arg0: i32) -> (i32, i32) {
    %c0_i32 = arith.constant 0 : i32
    %c0_i32_0 = arith.constant 0 : i32
    return %arg0, %c0_i32 : i32, i32
  }
  func.func @transform_4(%arg0: i32) -> (i32, i32) {
    %c0_i32 = arith.constant 0 : i32
    %c0_i32_0 = arith.constant 0 : i32
    return %c0_i32, %arg0 : i32, i32
  }
}

</mosaic_0001>

<bundles_post_ra>
// kernel: tpu_custom_call.1
= control target key start
LH: loop header
LB: loop body
LE: loop exit
PB: predicated region body
PF: predicated region fallthrough
CT: control target
= control target key end

     0   :  { %s259_s0 = inlined_call_operand.vmem [shape: f32[8,32], index: 0, kind: input, shape index: {}]   ;;  %s260_s1 = inlined_call_operand.vmem [shape: f32[32,16], index: 1, kind: input, shape index: {}]   ;;  %s261_s2 = inlined_call_operand.vmem [shape: f32[1,16], index: 2, kind: input, shape index: {}]   ;;  %s262_s3 = inlined_call_operand.vmem [shape: f32[8,1], index: 3, kind: input, shape index: {}]   ;;  %s263_s4 = inlined_call_operand.hbm [shape: s32[1,8], index: 4, kind: output, shape index: {}]  }
   0x1   :  { %v22_v0 = vld [vmem:[%s260_s1 + $0x18] sm:$0xff]  ;;  %v21_v1 = vld [vmem:[%s260_s1 + $0x10] sm:$0xff]  ;;  %v20_v2 = vld [vmem:[%s260_s1 + $0x8] sm:$0xff] }
   0x2   :  { %43 = vmatpush.msra.mxu0 %v22_v0 }
   0x3   :  { %9 = vsyncpa [#allocation3], 0  ;;  %v19_v3 = vld [vmem:[%s260_s1] sm:$0xff]  ;;  %vm27_vm0 = vcmask 261120   ;;  %vm51_vm1 = vcmask 130048   ;;  %v61_v9 = vlaneseq  ;;  %v201_v13 = vmov 1.0  }
   0x4   :  { %44 = vmatpush.msra.mxu0 %v21_v1  ;;  %v18_v4 = vld [vmem:[%s259_s0] sm:$0xff]  ;;  %v202_v19 = vmov 0   ;;  %v203_v25 = vmov 0.0   ;;  %s143_s29 = sshll.u32 %s263_s4, 4  ;;  %vm134_vm6 = vcmask 57344   ;;  %s144_s29 = int_to_ptr.hbm [resolvable:$true] %s143_s29 }
   0x5   :  { %v172_v5 = vld [vmem:[%s261_s2] ss:$0 sm:$0xff]  ;;  %v62_v10 = vshrl.u32 %v61_v9, 7  ;;  %v65_v11 = vand.u32 127, %v61_v9  ;;  %170 = vset.pattern.permute.xlu1 %v202_v19  ;;  %171 = vset.pattern.permute.xlu0 %v202_v19  ;;  %s204_s2 = smov [#allocation2]  }
   0x6   :  { %45 = vmatpush.msra.mxu0 %v20_v2  ;;  %v95_v20 = vld [vmem:[%s262_s3] sm:$0xff]  ;;  %s141_s27 = sshll.u32 %s204_s2, 4  ;;  %s142_s27 = int_to_ptr.vmem [resolvable:$true] %s141_s27 }
   0x7   :  { %v63_v12 = vadd.s32 8, %v62_v10  ;;  %vm66_vm3 = vcmp.le.s32.totalorder %v62_v10, %v65_v11 }
   0x8   :  { %46 = vmatpush.msra.mxu0 %v19_v3 }
   0x9   :  { %152 = vmatmul.msk.f32.vlgmr.msra.gmra.mxu0 %vm27_vm0, %v18_v4  ;;  %vm67_vm2 = vcmp.le.s32.totalorder %v63_v12, %v65_v11 }
   0xa   :  { %155 = vmatpush.msk.msra.mxu1 %vm67_vm2, %v201_v13 }
   0xc   :  { %156 = vmatpush.msk.msra.mxu1 %vm66_vm3, %v201_v13 }
  0x86   :  { %v48_v6 = vpop.f32.mrf.mxu0 }
  0x87   :  { %v49_v7 = vadd.f32 %v172_v5, %v48_v6 }
  0x89   :  { %v52_v8 = vsel %vm51_vm1, %v49_v7, -inf }
  0x8a   :  { %53 = vmax.xlane.f32.xlu0 %v52_v8 }
  0xfd   :  { %v54_v14 = vpop.xlane.xlu0 %53 }
  0xfe   :  { %v55_v15 = vsub.f32 %v49_v7, %v54_v14 }
 0x100   :  { %v56_v16 = vmul.f32 1.442695, %v55_v15 }
 0x102   :  { %173 = vpow2.f32 %v56_v16 }
 0x108   :  { %v174_v17 = vpop.eup %173 }
 0x109   :  { %157 = vmatmul.msk.f32.vlgmr.msra.gmra.mxu1 %vm51_vm1, %v174_v17  ;;  %v58_v18 = vsel %vm51_vm1, %v174_v17, 0.0 }
 0x10a   :  { %59 = vadd.xlane.f32.xlu0 %v58_v18 }
 0x17d   :  { %v60_v21 = vpop.xlane.xlu0 %59 }
 0x17e   :  { %v96_v22 = vmul.f32 %v95_v20, %v60_v21 }
 0x180   :  { %99 = vperm.xlu1 %170, %v96_v22  }
 0x186   :  { %v92_v23 = vpop.f32.mrf.mxu1 }
 0x1f2   :  { %v100_v24 = vpop.permute.xlu1 %99 }
 0x1f3   :  { %vm102_vm4 = vcmp.lt.f32.partialorder %v92_v23, %v100_v24 }
 0x1f4   :  { %v158_v26 = vsel %vm102_vm4, 1.0, %v203_v25 }
 0x1f5   :  { %159 = vmatpush.xpose.msk.msra.mxu2 %vm51_vm1, %v158_v26 }
 0x1f8   :  { %160 = vmatmul.msk.f32.vlgmr.msra.gmra.mxu2 %vm51_vm1, %v201_v13 }
 0x27b   :  { %v128_v27 = vpop.f32.mrf.mxu2 }
 0x27c   :  { %vm161_vm5 = vcmp.lt.s32.totalorder %v128_v27, 0  ;;  %v162_v28 = vceil.f32 %v128_v27  ;;  %v163_v29 = vfloor.f32 %v128_v27 }
 0x27e   :  { %v164_v30 = vsel %vm161_vm5, %v162_v28, %v163_v29 }
 0x27f   :  { %v165_v31 = vcvt.f32.s32 %v164_v30 }
 0x281   :  { %vm132_vm7 = vcmp.lt.s32.totalorder %v165_v31, 15 }
 0x282   :  { %v133_v32 = vsel %vm132_vm7, %v165_v31, 15 }
 0x283   :  { %135 = vst.msk [vmem:[#allocation2] sm:$0x1] %vm134_vm6, %v133_v32 }
 0x284   :  { %146 = dma.vmem_to_hbm [thread:$0]  %s142_s27, 16, %s144_s29, [#allocation3]  }
 0x285   :  { %199 = dma.done.wait [#allocation3], 16  }
 0x286   :  { %200 = vsyncadd [#allocation3], 4294967280 }
 0x287   :  { %151 = vsyncpa [#allocation3], 1 }

</bundles_post_ra>
